<compile_context>
chip_gen: v7x
topology: tpu7x:2x2x1
jax: 0.10.0
libtpu: 0.0.40
codegen_flags: <defaults>
</compile_context>

<pallas_src>
import jax
import jax.numpy as jnp
from jax.experimental import pallas as pl
from jax.experimental.pallas import tpu as pltpu

_PACK = 16          # packed output lanes: [0:8]=mean, [8]=value, [9:16]=zero pad
_ACTION_DIM = 8
_MAX_BATCH_TILE = 1024


def _policy_kernel(x_ref,
                   w1_ref, b1_ref, w2_ref, b2_ref,
                   wh_ref, bh_ref, wo_ref, bo_ref,
                   out_ref):
    """Fused MLP: trunk -> fused head layer 1 -> fused (block-diag) head layer 2."""
    cdt = w1_ref.dtype                       # bf16 MXU input dtype
    edt = b1_ref.dtype                       # elementwise dtype (bf16 on v6e/v7x, f32 on v5e)
    x = x_ref[...]

    # trunk: ReLU(Linear(state_dim,256)) -> ReLU(Linear(256,128))   (f32 accumulate)
    h1 = jnp.dot(x, w1_ref[...], preferred_element_type=jnp.float32).astype(edt)
    h1 = jnp.maximum(h1 + b1_ref[...], 0)
    h2 = jnp.dot(h1.astype(cdt), w2_ref[...],
                 preferred_element_type=jnp.float32).astype(edt)
    h2 = jnp.maximum(h2 + b2_ref[...], 0)

    # fused head first layer: [mean_hidden | value_hidden] = ReLU(h2 @ (wm1||wv1))
    hh = jnp.dot(h2.astype(cdt), wh_ref[...],
                 preferred_element_type=jnp.float32).astype(edt)
    hh = jnp.maximum(hh + bh_ref[...], 0)     # (B, 128)

    # fused head output layer: block-diagonal (128,16) -> packed [mean(8)|value(1)|pad]
    y = jnp.dot(hh.astype(cdt), wo_ref[...],
                preferred_element_type=jnp.float32) + bo_ref[...]   # (B, 16) f32

    # tanh only on the mean lanes (0..7); the value lane passes through untouched.
    lane = jax.lax.broadcasted_iota(jnp.int32, y.shape, 1)
    y = jnp.where(lane < _ACTION_DIM, jnp.tanh(y), y)

    out_ref[...] = y.astype(out_ref.dtype)


def _default_elementwise_dtype():
    """bf16 elementwise on v6e/v7x (bf16-native VPU), f32 on v5e (no bf16 VALU)."""
    try:
        kind = jax.devices()[0].device_kind.lower()
    except Exception:
        kind = ""
    return jnp.float32 if "v5" in kind else jnp.bfloat16


def _pick_batch_tile(B, requested=None):
    """Largest multiple-of-16 divisor of B, capped at _MAX_BATCH_TILE, with
    >= 2 grid steps when B >= 32 (so v7x megacore gets both TCs)."""
    if requested is not None and 16 <= requested <= B and B % requested == 0:
        return requested
    if B < 32:
        return B                               # single grid point for tiny batches
    tb = min(_MAX_BATCH_TILE, (B // 2) // 16 * 16)
    while tb >= 16:
        if B % tb == 0:
            return tb
        tb -= 16
    return B                                   # no nice divisor -> one grid point


def init_params(key, state_dim, action_dim=_ACTION_DIM, dtype=jnp.float32):
    """PyTorch-Linear-style init (uniform +-1/sqrt(fan_in)), sampled in f32.

    Weights are stored as (in_features, out_features)."""
    assert action_dim == _ACTION_DIM

    def linear(key, fan_in, fan_out):
        kw, kb = jax.random.split(key)
        bound = 1.0 / jnp.sqrt(fan_in)
        w = jax.random.uniform(kw, (fan_in, fan_out), dtype, -bound, bound)
        b = jax.random.uniform(kb, (1, fan_out), dtype, -bound, bound)
        return w, b

    keys = jax.random.split(key, 6)
    w1, b1 = linear(keys[0], state_dim, 256)
    w2, b2 = linear(keys[1], 256, 128)
    wm1, bm1 = linear(keys[2], 128, 64)
    wm2, bm2 = linear(keys[3], 64, action_dim)
    wv1, bv1 = linear(keys[4], 128, 64)
    wv2, bv2 = linear(keys[5], 64, 1)
    log_std = jnp.zeros((1, action_dim), dtype)     # nn.Parameter(torch.zeros(8))
    return dict(w1=w1, b1=b1, w2=w2, b2=b2,
                wm1=wm1, bm1=bm1, wm2=wm2, bm2=bm2,
                wv1=wv1, bv1=bv1, wv2=wv2, bv2=bv2,
                log_std=log_std)


def prepare_inference_params(params, compute_dtype=jnp.bfloat16,
                             elementwise_dtype=None):
    """Fuse the heads, pad K to a lane-dense multiple of 128, cast weights to the
    bf16 MXU dtype and biases to the elementwise dtype.  std is precomputed."""
    f32 = jnp.float32
    if elementwise_dtype is None:
        elementwise_dtype = _default_elementwise_dtype()
    action_dim = params["log_std"].shape[1]
    state_dim = params["w1"].shape[0]

    # Zero-pad w1's K dimension to a multiple of 128 (lane-dense x loads).
    k_pad = max(128, -(-state_dim // 128) * 128)
    w1 = jnp.zeros((k_pad, 256), f32).at[:state_dim, :].set(params["w1"].astype(f32))

    # Fused head first layer: (128, 64)||(128, 64) -> (128, 128)
    wh = jnp.concatenate([params["wm1"], params["wv1"]], axis=1)
    bh = jnp.concatenate([params["bm1"], params["bv1"]], axis=1)

    # Fused block-diagonal head output layer: (128, 16)
    #   rows 0..63   (mean hidden)  -> cols 0..7   (mean)
    #   rows 64..127 (value hidden) -> col  8      (value)
    wo = jnp.zeros((128, _PACK), f32)
    wo = wo.at[:64, :action_dim].set(params["wm2"].astype(f32))
    wo = wo.at[64:, action_dim:action_dim + 1].set(params["wv2"].astype(f32))
    bo = jnp.zeros((1, _PACK), f32)
    bo = bo.at[:, :action_dim].set(params["bm2"].astype(f32))
    bo = bo.at[:, action_dim:action_dim + 1].set(params["bv2"].astype(f32))

    edt = elementwise_dtype
    return dict(
        w1=w1.astype(compute_dtype),           b1=params["b1"].astype(edt),
        w2=params["w2"].astype(compute_dtype), b2=params["b2"].astype(edt),
        wh=wh.astype(compute_dtype),           bh=bh.astype(edt),
        wo=wo.astype(compute_dtype),           bo=bo.astype(f32),
        std=jnp.exp(params["log_std"].astype(f32)).reshape(action_dim),
    )


def actor_critic_forward(x, inf_params, *, batch_tile=None):
    """Returns (mean (B,8), std (8,), value (B,1)) matching the PyTorch forward."""
    B, state_dim = x.shape
    compute_dtype = inf_params["w1"].dtype
    k_pad = inf_params["w1"].shape[0]

    # Lane-dense input: zero-pad the feature dim to k_pad (multiple of 128).
    x = x.astype(compute_dtype)
    if state_dim < k_pad:
        x = jnp.pad(x, ((0, 0), (0, k_pad - state_dim)))

    TB = _pick_batch_tile(B, batch_tile)
    grid = (B // TB,)

    x_map = lambda i: (i, 0)
    w_map = lambda i: (0, 0)          # weights: same (resident) block every step
    wspec = lambda arr: pl.BlockSpec(arr.shape, w_map)

    # Advisory cost for XLA's scheduler (flops per packed forward).
    flops = 2 * B * (k_pad * 256 + 256 * 128 + 128 * 128 + 128 * _PACK)
    weight_bytes = sum(int(inf_params[k].size) * inf_params[k].dtype.itemsize
                       for k in ("w1", "b1", "w2", "b2", "wh", "bh", "wo", "bo"))
    cost = pl.CostEstimate(
        flops=flops,
        transcendentals=B * _PACK,
        bytes_accessed=B * k_pad * 2 + B * _PACK * 4 + weight_bytes,
    )

    packed = pl.pallas_call(
        _policy_kernel,
        out_shape=jax.ShapeDtypeStruct((B, _PACK), jnp.float32),
        grid_spec=pltpu.PrefetchScalarGridSpec(
            num_scalar_prefetch=0,
            grid=grid,
            in_specs=[
                pl.BlockSpec((TB, k_pad), x_map),
                wspec(inf_params["w1"]), wspec(inf_params["b1"]),
                wspec(inf_params["w2"]), wspec(inf_params["b2"]),
                wspec(inf_params["wh"]), wspec(inf_params["bh"]),
                wspec(inf_params["wo"]), wspec(inf_params["bo"]),
            ],
            out_specs=pl.BlockSpec((TB, _PACK), x_map),
        ),
        compiler_params=pltpu.CompilerParams(
            dimension_semantics=("parallel",)),
        cost_estimate=cost,
    )(x,
      inf_params["w1"], inf_params["b1"], inf_params["w2"], inf_params["b2"],
      inf_params["wh"], inf_params["bh"], inf_params["wo"], inf_params["bo"])

    mean = packed[:, :_ACTION_DIM]
    value = packed[:, _ACTION_DIM:_ACTION_DIM + 1]
    std = inf_params["std"]           # exp(log_std), constant w.r.t. x
    return mean, std, value


def _reference_forward(x, p):
    """Pure-JAX f32 reference for correctness checking (unfused, unquantized)."""
    h = jnp.maximum(x @ p["w1"] + p["b1"], 0.0)
    h = jnp.maximum(h @ p["w2"] + p["b2"], 0.0)
    m = jnp.maximum(h @ p["wm1"] + p["bm1"], 0.0)
    mean = jnp.tanh(m @ p["wm2"] + p["bm2"])
    v = jnp.maximum(h @ p["wv1"] + p["bv1"], 0.0)
    value = v @ p["wv2"] + p["bv2"]
    std = jnp.exp(p["log_std"]).reshape(-1)
    return mean, std, value


if __name__ == "__main__":
    B = 2
    STATE_DIM = 32
    ACTION_DIM = 8

    key = jax.random.PRNGKey(0)
    k_params, k_x = jax.random.split(key)
    params = init_params(k_params, STATE_DIM, ACTION_DIM)        # f32 init
    inf_params = prepare_inference_params(params)                # fused + bf16 + K-pad
    x = jax.random.normal(k_x, (B, STATE_DIM), jnp.float32)

    mean, std, value = actor_critic_forward(x, inf_params)
    jax.block_until_ready((mean, std, value))

    # sanity check against the pure-JAX f32 reference (bf16 weights + bf16
    # elementwise epilogues on v6e/v7x -> loose tolerance)
    mean_r, std_r, value_r = _reference_forward(x, params)
    assert mean.shape == (B, ACTION_DIM)
    assert std.shape == (ACTION_DIM,)
    assert value.shape == (B, 1)
    assert jnp.allclose(mean, mean_r, atol=5e-2, rtol=5e-2)
    assert jnp.allclose(std, std_r, atol=1e-6)
    assert jnp.allclose(value, value_r, atol=5e-2, rtol=5e-2)

    print("KERNEL_OK")
</pallas_src>

<mosaic_0001>
module attributes {stable_mosaic.version = 11 : i64} {
  func.func @_policy_kernel(%arg0: i32, %arg1: memref<2x128xbf16, #tpu.memory_space<vmem>>, %arg2: memref<128x256xbf16, #tpu.memory_space<vmem>>, %arg3: memref<1x256xbf16, #tpu.memory_space<vmem>>, %arg4: memref<256x128xbf16, #tpu.memory_space<vmem>>, %arg5: memref<1x128xbf16, #tpu.memory_space<vmem>>, %arg6: memref<128x128xbf16, #tpu.memory_space<vmem>>, %arg7: memref<1x128xbf16, #tpu.memory_space<vmem>>, %arg8: memref<128x16xbf16, #tpu.memory_space<vmem>>, %arg9: memref<1x16xf32, #tpu.memory_space<vmem>>, %arg10: memref<2x16xf32, #tpu.memory_space<vmem>>) attributes {dimension_semantics = [#tpu.dimension_semantics<parallel>], iteration_bounds = array<i64: 1>, scalar_prefetch = 0 : i64, scratch_operands = 0 : i64, tpu.core_type = #tpu.core_type<tc>, window_params = [{transform_indices = @transform_0, window_bounds = array<i64: 2, 128>}, {pipeline_mode = #tpu.pipeline_mode<synchronous>, transform_indices = @transform_1, window_bounds = array<i64: 128, 256>}, {pipeline_mode = #tpu.pipeline_mode<synchronous>, transform_indices = @transform_2, window_bounds = array<i64: 1, 256>}, {pipeline_mode = #tpu.pipeline_mode<synchronous>, transform_indices = @transform_3, window_bounds = array<i64: 256, 128>}, {pipeline_mode = #tpu.pipeline_mode<synchronous>, transform_indices = @transform_4, window_bounds = array<i64: 1, 128>}, {pipeline_mode = #tpu.pipeline_mode<synchronous>, transform_indices = @transform_5, window_bounds = array<i64: 128, 128>}, {pipeline_mode = #tpu.pipeline_mode<synchronous>, transform_indices = @transform_6, window_bounds = array<i64: 1, 128>}, {pipeline_mode = #tpu.pipeline_mode<synchronous>, transform_indices = @transform_7, window_bounds = array<i64: 128, 16>}, {pipeline_mode = #tpu.pipeline_mode<synchronous>, transform_indices = @transform_8, window_bounds = array<i64: 1, 16>}, {transform_indices = @transform_9, window_bounds = array<i64: 2, 16>}]} {
    %c0 = arith.constant 0 : index
    %c0_0 = arith.constant 0 : index
    %0 = vector.load %arg1[%c0, %c0_0] : memref<2x128xbf16, #tpu.memory_space<vmem>>, vector<2x128xbf16>
    %c0_1 = arith.constant 0 : index
    %c0_2 = arith.constant 0 : index
    %1 = vector.load %arg2[%c0_1, %c0_2] : memref<128x256xbf16, #tpu.memory_space<vmem>>, vector<128x256xbf16>
    %cst = arith.constant dense<0.000000e+00> : vector<2x256xf32>
    %2 = tpu.matmul %0, %1, %cst {dimension_numbers = #tpu.dot_dimension_numbers<[1], [0], [0], [1], [0, 0, 1, 1], [], []>} : vector<2x128xbf16>, vector<128x256xbf16>, vector<2x256xf32> -> vector<2x256xf32>
    %3 = arith.truncf %2 : vector<2x256xf32> to vector<2x256xbf16>
    %c0_3 = arith.constant 0 : index
    %c0_4 = arith.constant 0 : index
    %4 = vector.load %arg3[%c0_3, %c0_4] : memref<1x256xbf16, #tpu.memory_space<vmem>>, vector<1x256xbf16>
    %5 = vector.broadcast %4 : vector<1x256xbf16> to vector<2x256xbf16>
    %6 = arith.addf %3, %5 : vector<2x256xbf16>
    %cst_5 = arith.constant 0.000000e+00 : bf16
    %7 = vector.broadcast %cst_5 : bf16 to vector<2x256xbf16>
    %8 = arith.maximumf %6, %7 : vector<2x256xbf16>
    %c0_6 = arith.constant 0 : index
    %c0_7 = arith.constant 0 : index
    %9 = vector.load %arg4[%c0_6, %c0_7] : memref<256x128xbf16, #tpu.memory_space<vmem>>, vector<256x128xbf16>
    %cst_8 = arith.constant dense<0.000000e+00> : vector<2x128xf32>
    %10 = tpu.matmul %8, %9, %cst_8 {dimension_numbers = #tpu.dot_dimension_numbers<[1], [0], [0], [1], [0, 0, 1, 1], [], []>} : vector<2x256xbf16>, vector<256x128xbf16>, vector<2x128xf32> -> vector<2x128xf32>
    %11 = arith.truncf %10 : vector<2x128xf32> to vector<2x128xbf16>
    %c0_9 = arith.constant 0 : index
    %c0_10 = arith.constant 0 : index
    %12 = vector.load %arg5[%c0_9, %c0_10] : memref<1x128xbf16, #tpu.memory_space<vmem>>, vector<1x128xbf16>
    %13 = vector.broadcast %12 : vector<1x128xbf16> to vector<2x128xbf16>
    %14 = arith.addf %11, %13 : vector<2x128xbf16>
    %cst_11 = arith.constant 0.000000e+00 : bf16
    %15 = vector.broadcast %cst_11 : bf16 to vector<2x128xbf16>
    %16 = arith.maximumf %14, %15 : vector<2x128xbf16>
    %c0_12 = arith.constant 0 : index
    %c0_13 = arith.constant 0 : index
    %17 = vector.load %arg6[%c0_12, %c0_13] : memref<128x128xbf16, #tpu.memory_space<vmem>>, vector<128x128xbf16>
    %cst_14 = arith.constant dense<0.000000e+00> : vector<2x128xf32>
    %18 = tpu.matmul %16, %17, %cst_14 {dimension_numbers = #tpu.dot_dimension_numbers<[1], [0], [0], [1], [0, 0, 1, 1], [], []>} : vector<2x128xbf16>, vector<128x128xbf16>, vector<2x128xf32> -> vector<2x128xf32>
    %19 = arith.truncf %18 : vector<2x128xf32> to vector<2x128xbf16>
    %c0_15 = arith.constant 0 : index
    %c0_16 = arith.constant 0 : index
    %20 = vector.load %arg7[%c0_15, %c0_16] : memref<1x128xbf16, #tpu.memory_space<vmem>>, vector<1x128xbf16>
    %21 = vector.broadcast %20 : vector<1x128xbf16> to vector<2x128xbf16>
    %22 = arith.addf %19, %21 : vector<2x128xbf16>
    %cst_17 = arith.constant 0.000000e+00 : bf16
    %23 = vector.broadcast %cst_17 : bf16 to vector<2x128xbf16>
    %24 = arith.maximumf %22, %23 : vector<2x128xbf16>
    %c0_18 = arith.constant 0 : index
    %c0_19 = arith.constant 0 : index
    %25 = vector.load %arg8[%c0_18, %c0_19] : memref<128x16xbf16, #tpu.memory_space<vmem>>, vector<128x16xbf16>
    %cst_20 = arith.constant dense<0.000000e+00> : vector<2x16xf32>
    %26 = tpu.matmul %24, %25, %cst_20 {dimension_numbers = #tpu.dot_dimension_numbers<[1], [0], [0], [1], [0, 0, 1, 1], [], []>} : vector<2x128xbf16>, vector<128x16xbf16>, vector<2x16xf32> -> vector<2x16xf32>
    %c0_21 = arith.constant 0 : index
    %c0_22 = arith.constant 0 : index
    %27 = vector.load %arg9[%c0_21, %c0_22] : memref<1x16xf32, #tpu.memory_space<vmem>>, vector<1x16xf32>
    %28 = vector.broadcast %27 : vector<1x16xf32> to vector<2x16xf32>
    %29 = arith.addf %26, %28 : vector<2x16xf32>
    %30 = tpu.iota {dimensions = array<i32: 1>} : vector<2x16xi32>
    %c8_i32 = arith.constant 8 : i32
    %31 = vector.broadcast %c8_i32 : i32 to vector<2x16xi32>
    %32 = arith.cmpi slt, %30, %31 : vector<2x16xi32>
    %33 = math.tanh %29 : vector<2x16xf32>
    %34 = arith.select %32, %33, %29 : vector<2x16xi1>, vector<2x16xf32>
    %c0_23 = arith.constant 0 : index
    %c0_24 = arith.constant 0 : index
    %35 = vector.load %arg10[%c0_23, %c0_24] : memref<2x16xf32, #tpu.memory_space<vmem>>, vector<2x16xf32>
    tpu.vector_store %arg10[%c0_23, %c0_24], %34 {strides = array<i32>} : memref<2x16xf32, #tpu.memory_space<vmem>>, vector<2x16xf32>,
    return
  }
  func.func @transform_0(%arg0: i32) -> (i32, i32) {
    %c0_i32 = arith.constant 0 : i32
    %c0_i32_0 = arith.constant 0 : i32
    return %arg0, %c0_i32 : i32, i32
  }
  func.func @transform_1(%arg0: i32) -> (i32, i32) {
    %c0_i32 = arith.constant 0 : i32
    %c0_i32_0 = arith.constant 0 : i32
    %c0_i32_1 = arith.constant 0 : i32
    return %c0_i32, %c0_i32_0 : i32, i32
  }
  func.func @transform_2(%arg0: i32) -> (i32, i32) {
    %c0_i32 = arith.constant 0 : i32
    %c0_i32_0 = arith.constant 0 : i32
    %c0_i32_1 = arith.constant 0 : i32
    return %c0_i32, %c0_i32_0 : i32, i32
  }
  func.func @transform_3(%arg0: i32) -> (i32, i32) {
    %c0_i32 = arith.constant 0 : i32
    %c0_i32_0 = arith.constant 0 : i32
    %c0_i32_1 = arith.constant 0 : i32
    return %c0_i32, %c0_i32_0 : i32, i32
  }
  func.func @transform_4(%arg0: i32) -> (i32, i32) {
    %c0_i32 = arith.constant 0 : i32
    %c0_i32_0 = arith.constant 0 : i32
    %c0_i32_1 = arith.constant 0 : i32
    return %c0_i32, %c0_i32_0 : i32, i32
  }
  func.func @transform_5(%arg0: i32) -> (i32, i32) {
    %c0_i32 = arith.constant 0 : i32
    %c0_i32_0 = arith.constant 0 : i32
    %c0_i32_1 = arith.constant 0 : i32
    return %c0_i32, %c0_i32_0 : i32, i32
  }
  func.func @transform_6(%arg0: i32) -> (i32, i32) {
    %c0_i32 = arith.constant 0 : i32
    %c0_i32_0 = arith.constant 0 : i32
    %c0_i32_1 = arith.constant 0 : i32
    return %c0_i32, %c0_i32_0 : i32, i32
  }
  func.func @transform_7(%arg0: i32) -> (i32, i32) {
    %c0_i32 = arith.constant 0 : i32
    %c0_i32_0 = arith.constant 0 : i32
    %c0_i32_1 = arith.constant 0 : i32
    return %c0_i32, %c0_i32_0 : i32, i32
  }
  func.func @transform_8(%arg0: i32) -> (i32, i32) {
    %c0_i32 = arith.constant 0 : i32
    %c0_i32_0 = arith.constant 0 : i32
    %c0_i32_1 = arith.constant 0 : i32
    return %c0_i32, %c0_i32_0 : i32, i32
  }
  func.func @transform_9(%arg0: i32) -> (i32, i32) {
    %c0_i32 = arith.constant 0 : i32
    %c0_i32_0 = arith.constant 0 : i32
    return %arg0, %c0_i32 : i32, i32
  }
}

</mosaic_0001>

<bundles_post_ra>
// kernel: tpu_custom_call.1
= control target key start
LH: loop header
LB: loop body
LE: loop exit
PB: predicated region body
PF: predicated region fallthrough
CT: control target
= control target key end

     0   :  { %14 = vsyncpa [#allocation3], 0  ;;  %s1128_s0 = inlined_call_operand.vmem [shape: bf16[2,128], index: 0, kind: input, shape index: {}]   ;;  %s1129_s1 = inlined_call_operand.hbm [shape: bf16[128,256], index: 1, kind: input, shape index: {}]   ;;  %s1130_s2 = inlined_call_operand.vmem [shape: bf16[1,256], index: 2, kind: input, shape index: {}]   ;;  %s1131_s3 = inlined_call_operand.hbm [shape: bf16[256,128], index: 3, kind: input, shape index: {}]   ;;  %s1132_s4 = inlined_call_operand.vmem [shape: bf16[1,128], index: 4, kind: input, shape index: {}]   ;;  %s1133_s5 = inlined_call_operand.vmem [shape: bf16[128,128], index: 5, kind: input, shape index: {}]   ;;  %s1134_s6 = inlined_call_operand.vmem [shape: bf16[1,128], index: 6, kind: input, shape index: {}]   ;;  %s1135_s7 = inlined_call_operand.vmem [shape: bf16[128,16], index: 7, kind: input, shape index: {}]   ;;  %s1136_s8 = inlined_call_operand.vmem [shape: f32[1,16], index: 8, kind: input, shape index: {}]   ;;  %s1137_s9 = inlined_call_operand.hbm [shape: f32[2,16], index: 9, kind: output, shape index: {}]  }
   0x1   :  { %15 = vsyncpa [#allocation6], 0 }
   0x2   :  { %16 = vsyncpa [#allocation4], 0  ;;  %s943_s30 = smov [#allocation2]   ;;  %s871_s13 = scalar_lea.hbm %s1129_s1, 2048 }
   0x3   :  { %s24_s10 = sshll.u32 %s943_s30, 4  ;;  %p872_p0 = scmp.ne.s32.totalorder %s1129_s1, %s871_s13  ;;  %s25_s10 = int_to_ptr.vmem [resolvable:$true] %s24_s10 }
   0x4   :  { %p875_p1 = scmp.lt.u32.totalorder %s871_s13, %s1129_s1 }
   0x6   :  { %p877_p2 = pnand %p875_p1, %p872_p0 }
   0x8   :  { %880 = shalt.err (!%p877_p2)
}
   0x9   :  { %s881_s18 = scalar_lea.vmem %s25_s10, 2048  ;;  %p886_p4 = scmp.lt.s32.totalorder %s25_s10, %s25_s10 }
   0xa   :  { %p882_p3 = scmp.ne.s32.totalorder %s25_s10, %s881_s18  ;;  %p887_p5 = scmp.lt.s32.totalorder %s881_s18, %s881_s18 }
   0xc   :  { %p888_p6 = por %p887_p5, %p886_p4 }
   0xe   :  { %p889_p7 = pnand %p888_p6, %p882_p3 }
  0x10   :  { %892 = shalt.err (!%p889_p7)
}
  0x11   :  { %s944_s19 = smov 128   ;;  %s945_s20 = smov 8  }
  0x12   :  { %30 = dma.hbm_to_vmem [thread:$0]  %s1129_s1, 2048, %s25_s10, [#allocation3], %s944_s19, %s944_s19, %s945_s20  }
  0x13   :  { %s946_s23 = smov [#allocation5]   ;;  %s893_s27 = scalar_lea.hbm %s1131_s3, 2048 }
  0x14   :  { %s38_s24 = sshll.u32 %s946_s23, 4  ;;  %p894_p8 = scmp.ne.s32.totalorder %s1131_s3, %s893_s27  ;;  %s39_s24 = int_to_ptr.vmem [resolvable:$true] %s38_s24 }
  0x15   :  { %p897_p9 = scmp.lt.u32.totalorder %s893_s27, %s1131_s3 }
  0x17   :  { %p899_p10 = pnand %p897_p9, %p894_p8 }
  0x19   :  { %902 = shalt.err (!%p899_p10)
}
  0x1a   :  { %s903_s12 = scalar_lea.vmem %s39_s24, 2048  ;;  %p908_p12 = scmp.lt.s32.totalorder %s39_s24, %s39_s24 }
  0x1b   :  { %p904_p11 = scmp.ne.s32.totalorder %s39_s24, %s903_s12  ;;  %p909_p13 = scmp.lt.s32.totalorder %s903_s12, %s903_s12 }
  0x1d   :  { %p910_p0 = por %p909_p13, %p908_p12 }
  0x1f   :  { %p911_p1 = pnand %p910_p0, %p904_p11 }
  0x21   :  { %914 = shalt.err (!%p911_p1)
}
  0x22   :  { %s947_s1 = smov 64   ;;  %s948_s10 = smov 4  }
  0x23   :  { %44 = dma.hbm_to_vmem [thread:$0]  %s1131_s3, 2048, %s39_s24, [#allocation6], %s947_s1, %s947_s1, %s948_s10  }
  0x24   :  { %937 = dma.done.wait [#allocation3], 2048  }
  0x25   :  { %938 = vsyncadd [#allocation3], 4294965248 }
  0x26   :  { %939 = dma.done.wait [#allocation6], 2048  }
  0x27   :  { %940 = vsyncadd [#allocation6], 4294965248  ;;  %v949_v0 = vmov 0   ;;  %v813_v1 = vld [vmem:[#allocation2 + $0x4] ss:$8 sps:$4 sm:$0xff]   ;;  %v841_v15 = vld [vmem:[#allocation5 + $0x50] sm:$0xff]   ;;  %v215_v43 = vlaneseq }
  0x28   :  { %191 = vmatprep.mubr.bf16.mxu0 %v949_v0  ;;  %v815_v2 = vld [vmem:[#allocation2] ss:$8 sps:$4 sm:$0xff]   ;;  %159 = vmatprep.subr.bf16.mxu0 %v813_v1  ;;  %v816_v3 = vld [vmem:[#allocation2 + $0x14] ss:$8 sps:$4 sm:$0xff]   ;;  %v818_v4 = vld [vmem:[#allocation2 + $0x10] ss:$8 sps:$4 sm:$0xff]  }
  0x29   :  { %160 = vmatpush1.bf16.msra.mxu0 %v815_v2  ;;  %v819_v5 = vld [vmem:[#allocation2 + $0x24] ss:$8 sps:$4 sm:$0xff]   ;;  %v821_v6 = vld [vmem:[#allocation2 + $0x20] ss:$8 sps:$4 sm:$0xff]   ;;  %v822_v7 = vld [vmem:[#allocation2 + $0x34] ss:$8 sps:$4 sm:$0xff]  }
  0x2a   :  { %161 = vmatprep.subr.bf16.mxu0 %v816_v3  ;;  %v824_v8 = vld [vmem:[#allocation2 + $0x30] ss:$8 sps:$4 sm:$0xff]   ;;  %v825_v9 = vld [vmem:[#allocation2 + $0x44] ss:$8 sps:$4 sm:$0xff]   ;;  %v827_v12 = vld [vmem:[#allocation2 + $0x40] ss:$8 sps:$4 sm:$0xff]  }
  0x2b   :  { %v837_v10 = vld [vmem:[#allocation5 + $0x40] sm:$0xff]   ;;  %v839_v13 = vld [vmem:[#allocation5 + $0x48] sm:$0xff]   ;;  %v828_v16 = vld [vmem:[#allocation2 + $0x54] ss:$8 sps:$4 sm:$0xff]   ;;  %v950_v35 = vmov 0.0   ;;  %v216_v45 = vshrl.u32 %v215_v43, 7 }
  0x2c   :  { %v838_v11 = vld [vmem:[#allocation5] sm:$0xff]   ;;  %722 = vmatprep.subr.bf16.mxu1 %v837_v10  ;;  %v840_v14 = vld [vmem:[#allocation5 + $0x8] sm:$0xff]   ;;  %v830_v17 = vld [vmem:[#allocation2 + $0x50] ss:$8 sps:$4 sm:$0xff]   ;;  %v951_v41 = vmov 1966171168  }
  0x2d   :  { %162 = vmatpush1.bf16.msra.mxu0 %v818_v4  ;;  %723 = vmatpush3.bf16.msra.mxu1 %v838_v11  ;;  %v842_v18 = vld [vmem:[#allocation5 + $0x10] sm:$0xff]   ;;  %v843_v19 = vld [vmem:[#allocation5 + $0x58] sm:$0xff]   ;;  %v831_v20 = vld [vmem:[#allocation2 + $0x64] ss:$8 sps:$4 sm:$0xff]   ;;  %v213_v42 = vunpack.c.l.s4 %v951_v41  ;;  %v231_v52 = vsub.s32 0, %v216_v45  ;;  %vm952_vm0 = vmmov 0  }
  0x2e   :  { %163 = vmatprep.subr.bf16.mxu0 %v819_v5  ;;  %724 = vmatprep.subr.bf16.mxu1 %v839_v13  ;;  %v833_v21 = vld [vmem:[#allocation2 + $0x60] ss:$8 sps:$4 sm:$0xff]   ;;  %v844_v22 = vld [vmem:[#allocation5 + $0x18] sm:$0xff]   ;;  %v849_v30 = vld [vmem:[#allocation5 + $0x70] sm:$0xff]   ;;  %vm654_vm2 = vcmask 123904  }
  0x2f   :  { %v834_v23 = vld [vmem:[#allocation2 + $0x74] ss:$8 sps:$4 sm:$0xff]   ;;  %v845_v24 = vld [vmem:[#allocation5 + $0x60] sm:$0xff]   ;;  %v836_v26 = vld [vmem:[#allocation2 + $0x70] ss:$8 sps:$4 sm:$0xff]   ;;  %v214_v44 = vunpack.c.0.s8 %v213_v42 }
  0x30   :  { %v846_v25 = vld [vmem:[#allocation5 + $0x20] sm:$0xff]   ;;  %v847_v27 = vld [vmem:[#allocation5 + $0x68] sm:$0xff]   ;;  %v850_v31 = vld [vmem:[#allocation5 + $0x30] sm:$0xff]  }
  0x31   :  { %164 = vmatpush1.bf16.msra.mxu0 %v821_v6  ;;  %725 = vmatpush3.bf16.msra.mxu1 %v840_v14  ;;  %v848_v28 = vld [vmem:[#allocation5 + $0x28] sm:$0xff]   ;;  %v62_v29 = vld [vmem:[%s1128_s0] sm:$0x1]  ;;  %v851_v32 = vld [vmem:[#allocation5 + $0x78] sm:$0xff]   ;;  %v217_v47 = vsub.s32 %v214_v44, %v216_v45 }
  0x32   :  { %165 = vmatprep.subr.bf16.mxu0 %v822_v7  ;;  %726 = vmatprep.subr.bf16.mxu1 %v841_v15  ;;  %v852_v33 = vld [vmem:[#allocation5 + $0x38] sm:$0xff]   ;;  %v853_v34 = vld [vmem:[%s1133_s5] sm:$0xff]   ;;  %v854_v36 = vld [vmem:[%s1133_s5 + $0x8] sm:$0xff]  }
  0x33   :  { %v855_v37 = vld [vmem:[%s1133_s5 + $0x10] sm:$0xff]   ;;  %v856_v38 = vld [vmem:[%s1133_s5 + $0x18] sm:$0xff]   ;;  %v857_v39 = vld [vmem:[%s1133_s5 + $0x20] sm:$0xff]  }
  0x34   :  { %v858_v40 = vld [vmem:[%s1133_s5 + $0x28] sm:$0xff]   ;;  %v688_v46 = vld.sshfl [vmem:[%s1130_s2] sm:$0x11 pattern:$0x75316420]  ;;  %v859_v3 = vld [vmem:[%s1133_s5 + $0x30] sm:$0xff]  }
  0x35   :  { %166 = vmatpush1.bf16.msra.mxu0 %v824_v8  ;;  %727 = vmatpush3.bf16.msra.mxu1 %v842_v18  ;;  %v211_v48 = vcombine.high %v688_v46, %v688_v46  ;;  %v218_v49 = vrot.slane %v688_v46, %v217_v47  ;;  %v860_v4 = vld [vmem:[%s1133_s5 + $0x38] sm:$0xff]   ;;  %v861_v5 = vld [vmem:[%s1135_s7] sm:$0xff]   ;;  %v862_v6 = vld [vmem:[%s1135_s7 + $0x8] sm:$0xff]  }
  0x36   :  { %167 = vmatprep.subr.bf16.mxu0 %v825_v9  ;;  %728 = vmatprep.subr.bf16.mxu1 %v843_v19  ;;  %v863_v7 = vld [vmem:[%s1135_s7 + $0x10] sm:$0xff]   ;;  %v864_v8 = vld [vmem:[%s1135_s7 + $0x18] sm:$0xff]   ;;  %v865_v9 = vld [vmem:[%s1135_s7 + $0x20] sm:$0xff]  }
  0x37   :  { %v225_v50 = vrot.slane %v211_v48, %v217_v47  ;;  %v227_v51 = vpack.i.b16 %v218_v49, %v218_v49  ;;  %v866_v10 = vld [vmem:[%s1135_s7 + $0x28] sm:$0xff]   ;;  %v413_v11 = vld [vmem:[%s1132_s4] sm:$0x1] }
  0x39   :  { %168 = vmatpush1.bf16.msra.mxu0 %v827_v12  ;;  %729 = vmatpush3.bf16.msra.mxu1 %v844_v22  ;;  %v234_v53 = vpack.i.b16 %v225_v50, %v225_v50  ;;  %v232_v54 = vrot.slane %v227_v51, %v231_v52  ;;  %v415_v12 = vpack.i.b16 %v413_v11, %v413_v11  ;;  %v867_v22 = vld [vmem:[%s1135_s7 + $0x30] sm:$0xff]  }
  0x3a   :  { %169 = vmatprep.subr.bf16.mxu0 %v828_v16  ;;  %730 = vmatprep.subr.bf16.mxu1 %v845_v24  ;;  %v528_v24 = vld [vmem:[%s1134_s6] sm:$0x1]  ;;  %s953_s6 = smov [#allocation7]  }
  0x3b   :  { %v239_v56 = vrot.slane %v234_v53, %v231_v52  ;;  %v420_v16 = vrot.slane %v415_v12, %v231_v52 }
  0x3d   :  { %170 = vmatpush1.bf16.msra.mxu0 %v830_v17  ;;  %731 = vmatpush3.bf16.msra.mxu1 %v846_v25  ;;  %v530_v25 = vpack.i.b16 %v528_v24, %v528_v24 }
  0x3e   :  { %171 = vmatprep.subr.bf16.mxu0 %v831_v20  ;;  %732 = vmatprep.subr.bf16.mxu1 %v847_v27 }
  0x41   :  { %172 = vmatpush1.bf16.msra.mxu0 %v833_v21  ;;  %733 = vmatpush3.bf16.msra.mxu1 %v848_v28 }
  0x42   :  { %173 = vmatprep.subr.bf16.mxu0 %v834_v23  ;;  %734 = vmatprep.subr.bf16.mxu1 %v849_v30  ;;  %v868_v23 = vld [vmem:[%s1135_s7 + $0x38] sm:$0xff]   ;;  %s662_s7 = sshll.u32 %s953_s6, 4  ;;  %s663_s7 = int_to_ptr.vmem [resolvable:$true] %s662_s7 }
  0x43   :  { %s915_s28 = scalar_lea.vmem %s663_s7, 32  ;;  %p920_p3 = scmp.lt.s32.totalorder %s663_s7, %s663_s7 }
  0x44   :  { %p916_p2 = scmp.ne.s32.totalorder %s663_s7, %s915_s28  ;;  %p921_p4 = scmp.lt.s32.totalorder %s915_s28, %s915_s28 }
  0x45   :  { %174 = vmatpush1.bf16.msra.mxu0 %v836_v26  ;;  %735 = vmatpush3.bf16.msra.mxu1 %v850_v31  ;;  %v535_v26 = vrot.slane %v530_v25, %v231_v52 }
  0x46   :  { %736 = vmatprep.subr.bf16.mxu1 %v851_v32  ;;  %762 = vmatprep.subr.bf16.mxu0 %v950_v35  ;;  %p922_p5 = por %p921_p4, %p920_p3 }
  0x48   :  { %192 = vmatmul.mubr.bf16.vlgmr.msra.gmra.mrb[0].mxu0 %v62_v29  ;;  %p923_p6 = pnand %p922_p5, %p916_p2 }
  0x49   :  { %737 = vmatpush3.bf16.msra.mxu1 %v852_v33  ;;  %763 = vmatpush3.bf16.msra.mxu0 %v853_v34  ;;  %v713_v34 = vld [vmem:[%s1136_s8] ss:$0 sm:$0xff] }
  0x4a   :  { %782 = vmatprep.subr.bf16.mxu1 %v950_v35  ;;  %764 = vmatprep.subr.bf16.mxu0 %v950_v35 }
  0x4b   :  { %778 = vmatprep.mubr.msk.bf16.mxu0 %vm952_vm0, %v950_v35 }
  0x4d   :  { %765 = vmatpush3.bf16.msra.mxu0 %v854_v36 }
  0x4e   :  { %766 = vmatprep.subr.bf16.mxu0 %v950_v35 }
  0x51   :  { %767 = vmatpush3.bf16.msra.mxu0 %v855_v37 }
  0x52   :  { %768 = vmatprep.subr.bf16.mxu0 %v950_v35 }
  0x55   :  { %769 = vmatpush3.bf16.msra.mxu0 %v856_v38 }
  0x56   :  { %770 = vmatprep.subr.bf16.mxu0 %v950_v35 }
  0x59   :  { %771 = vmatpush3.bf16.msra.mxu0 %v857_v39 }
  0x5a   :  { %772 = vmatprep.subr.bf16.mxu0 %v950_v35 }
  0x5d   :  { %773 = vmatpush3.bf16.msra.mxu0 %v858_v40  ;;  %v650_v40 = vand.u32 127, %v215_v43 }
  0x5e   :  { %774 = vmatprep.subr.bf16.mxu0 %v950_v35 }
  0x5f   :  { %vm651_vm1 = vcmp.lt.s32.totalorder %v650_v40, 8 }
  0x61   :  { %775 = vmatpush3.bf16.msra.mxu0 %v859_v3 }
  0x62   :  { %776 = vmatprep.subr.bf16.mxu0 %v950_v35 }
  0x65   :  { %777 = vmatpush3.bf16.msra.mxu0 %v860_v4 }
 0x11b   :  { %v193_v55 = vpop.f32.mrb[0].mxu0 }
 0x11c   :  { %v200_v57 = vpack.c.bf16 %v193_v55, %v193_v55  ;;  %v195_v58 = vpop.f32.mrb[1].mxu0 }
 0x11d   :  { %v201_v59 = vpack.c.bf16 %v195_v58, %v195_v58  ;;  %v197_v60 = vpop.f32.mrb[2].mxu0 }
 0x11e   :  { %v240_v61 = vadd.bf16 %v232_v54, %v200_v57  ;;  %v198_v62 = vpop.f32.mrb[3].mxu0 }
 0x11f   :  { %v241_v63 = vadd.bf16 %v239_v56, %v201_v59 }
 0x120   :  { %v242_v2 = vmax.bf16 %v949_v0, %v240_v61 }
 0x121   :  { %v243_v1 = vmax.bf16 %v949_v0, %v241_v63 }
 0x123   :  { %404 = vmatprep.mubr.bf16.mxu1 %v243_v1 }
 0x124   :  { %405 = vmatmul.mubr.bf16.vlgmr.msra.gmra.mrb[0].mxu1 %v242_v2 }
 0x125   :  { %798 = vmatprep.mubr.msk.bf16.mxu1 %vm952_vm0, %v950_v35  ;;  %783 = vmatpush3.bf16.msra.mxu1 %v861_v5 }
 0x126   :  { %784 = vmatprep.subr.bf16.mxu1 %v950_v35 }
 0x129   :  { %785 = vmatpush3.bf16.msra.mxu1 %v862_v6 }
 0x12a   :  { %786 = vmatprep.subr.bf16.mxu1 %v950_v35 }
 0x12d   :  { %787 = vmatpush3.bf16.msra.mxu1 %v863_v7 }
 0x12e   :  { %788 = vmatprep.subr.bf16.mxu1 %v950_v35 }
 0x131   :  { %789 = vmatpush3.bf16.msra.mxu1 %v864_v8 }
 0x132   :  { %790 = vmatprep.subr.bf16.mxu1 %v950_v35 }
 0x135   :  { %791 = vmatpush3.bf16.msra.mxu1 %v865_v9 }
 0x136   :  { %792 = vmatprep.subr.bf16.mxu1 %v950_v35 }
 0x139   :  { %793 = vmatpush3.bf16.msra.mxu1 %v866_v10 }
 0x13a   :  { %794 = vmatprep.subr.bf16.mxu1 %v950_v35 }
 0x13d   :  { %795 = vmatpush3.bf16.msra.mxu1 %v867_v22 }
 0x13e   :  { %796 = vmatprep.subr.bf16.mxu1 %v950_v35 }
 0x141   :  { %797 = vmatpush3.bf16.msra.mxu1 %v868_v23 }
 0x1f7   :  { %v738_v13 = vpop.f32.mrb[0].mxu1 }
 0x1f8   :  { %v739_v14 = vpop.f32.mrb[1].mxu1 }
 0x1f9   :  { %v740_v15 = vadd.f32 %v739_v14, %v738_v13  ;;  %v741_v17 = vpop.f32.mrb[2].mxu1 }
 0x1fa   :  { %v742_v18 = vpop.f32.mrb[3].mxu1 }
 0x1fb   :  { %v412_v19 = vpack.c.bf16 %v740_v15, %v740_v15 }
 0x1fd   :  { %v421_v20 = vadd.bf16 %v420_v16, %v412_v19 }
 0x1ff   :  { %v422_v21 = vmax.bf16 %v949_v0, %v421_v20 }
 0x201   :  { %779 = vmatmul.mubr.bf16.vlgmr.msra.gmra.mrb[4].mxu0 %v422_v21 }
 0x2d4   :  { %v521_v27 = vpop.f32.mrb[4].mxu0 }
 0x2d5   :  { %v527_v28 = vpack.c.bf16 %v521_v27, %v521_v27  ;;  %v780_v29 = vpop.f32.mrb[5].mxu0 }
 0x2d6   :  { %v524_v30 = vpop.f32.mrb[6].mxu0 }
 0x2d7   :  { %v536_v31 = vadd.bf16 %v535_v26, %v527_v28  ;;  %v781_v32 = vpop.f32.mrb[7].mxu0 }
 0x2d9   :  { %v537_v33 = vmax.bf16 %v949_v0, %v536_v31 }
 0x2db   :  { %799 = vmatmul.mubr.bf16.vlgmr.msra.gmra.mrb[4].mxu1 %v537_v33 }
 0x3ae   :  { %v643_v35 = vpop.f32.mrb[4].mxu1 }
 0x3af   :  { %v644_v36 = vadd.f32 %v713_v34, %v643_v35  ;;  %v800_v37 = vpop.f32.mrb[5].mxu1 }
 0x3b0   :  { %v646_v38 = vpop.f32.mrb[6].mxu1 }
 0x3b1   :  { %869 = vtanh.f32 %v644_v36  ;;  %v801_v39 = vpop.f32.mrb[7].mxu1 }
 0x3bb   :  { %v870_v41 = vpop.eup %869 }
 0x3bc   :  { %v653_v0 = vsel %vm651_vm1, %v870_v41, %v644_v36 }
 0x3bd   :  { %655 = vst.msk [vmem:[#allocation7] sm:$0x3] %vm654_vm2, %v653_v0 }
 0x3be   :  { %926 = shalt.err (!%p923_p6)
}
 0x3bf   :  { %s927_s29 = scalar_lea.hbm %s1137_s9, 32 }
 0x3c0   :  { %p928_p7 = scmp.ne.s32.totalorder %s1137_s9, %s927_s29  ;;  %p931_p8 = scmp.lt.u32.totalorder %s927_s29, %s1137_s9 }
 0x3c2   :  { %p933_p9 = pnand %p931_p8, %p928_p7 }
 0x3c4   :  { %936 = shalt.err (!%p933_p9)
}
 0x3c5   :  { %665 = dma.vmem_to_hbm [thread:$0]  %s663_s7, 32, %s1137_s9, [#allocation4]  }
 0x3c6   :  { %941 = dma.done.wait [#allocation4], 32  }
 0x3c7   :  { %942 = vsyncadd [#allocation4], 4294967264 }
 0x3c8   :  { %669 = vsyncpa [#allocation3], 1 }
 0x3c9   :  { %670 = vsyncpa [#allocation6], 1 }
 0x3ca   :  { %671 = vsyncpa [#allocation4], 1 }

</bundles_post_ra>
